<compile_context>
chip_gen: v5e
topology: v5e:2x2
jax: 0.10.0
libtpu: 0.0.40
codegen_flags: <defaults>
</compile_context>

<pallas_src>
import functools

import jax
import jax.numpy as jnp
from jax.experimental import pallas as pl
from jax.experimental.pallas import tpu as pltpu


def _round_up(x: int, m: int) -> int:
    return ((x + m - 1) // m) * m


def _dqn_forward_kernel(x_ref, w1_ref, b1_ref, w3_ref, b3_ref, o_ref):
    # hidden = relu(x @ W1 + b1)   -- bf16 MXU inputs, f32 accumulate
    x = x_ref[...].astype(jnp.bfloat16)          # no-op when x is already bf16
    h = jnp.dot(x, w1_ref[...], preferred_element_type=jnp.float32)
    h = jnp.maximum(h + b1_ref[...], 0.0)
    # q = hidden @ W3 + b3
    q = jnp.dot(h.astype(jnp.bfloat16), w3_ref[...],
                preferred_element_type=jnp.float32)
    o_ref[...] = (q + b3_ref[...]).astype(o_ref.dtype)


@functools.partial(jax.jit, static_argnames=("block_b", "min_pallas_batch"))
def dqn_forward(observation, w1, b1, w3, b3, *,
                block_b: int = 2048, min_pallas_batch: int = 64):
    """Fused Linear -> ReLU -> Linear.

    observation: (B, obs_dim) f32 or bf16
    w1: (obs_dim, obs_dim//2) bf16,  b1: (1, obs_dim//2) f32
    w3: (obs_dim//2, action_dim) bf16, b3: (1, action_dim) f32
    returns: (B, action_dim) f32
    """
    B, obs_dim = observation.shape
    hidden = w1.shape[1]
    A = w3.shape[1]

    # --- small-batch fast path: skip Pallas entirely (common per-step case) ---
    if B < min_pallas_batch:
        xb = observation.astype(jnp.bfloat16)
        h = jnp.dot(xb, w1, preferred_element_type=jnp.float32) + b1
        h = jnp.maximum(h, 0.0)
        q = jnp.dot(h.astype(jnp.bfloat16), w3,
                    preferred_element_type=jnp.float32)
        return q + b3

    # --- batch tile sizing -------------------------------------------------
    # At least 2 grid steps so both v7x TensorCores get work ("parallel" axis);
    # harmless extra ~0.35us per step on single-TC chips.  Capped at block_b.
    TB = min(block_b, _round_up((B + 1) // 2, 8))
    TB = max(TB, 8)

    x_item = observation.dtype.itemsize
    weight_bytes = (obs_dim * hidden * w1.dtype.itemsize + hidden * b1.dtype.itemsize
                    + hidden * A * w3.dtype.itemsize + A * b3.dtype.itemsize)

    def _vmem_footprint(tb: int) -> int:
        tiles = 2 * tb * obs_dim * x_item + 2 * tb * A * 4      # double-buffered x/out
        interm = tb * hidden * 4 + tb * hidden * 2 + tb * A * 4  # h f32 + h bf16 + q f32
        return weight_bytes + tiles + interm

    VMEM_BUDGET_BYTES = 24 << 20   # conservative vs. v7x's 32 MiB scoped default
    while TB > 8 and _vmem_footprint(TB) > VMEM_BUDGET_BYTES:
        TB = max(8, _round_up(TB // 2, 8))

    grid = (pl.cdiv(B, TB),)

    flops = 2 * B * (obs_dim * hidden + hidden * A)
    bytes_accessed = (
        B * obs_dim * x_item           # x in
        + weight_bytes                 # weights DMA'd once (constant index_map)
        + B * A * 4                    # out (f32, unpadded)
    )

    out = pl.pallas_call(
        _dqn_forward_kernel,
        out_shape=jax.ShapeDtypeStruct((B, A), jnp.float32),
        grid_spec=pltpu.PrefetchScalarGridSpec(
            num_scalar_prefetch=0,
            grid=grid,
            in_specs=[
                # activations: one batch tile per grid step (last tile may be ragged)
                pl.BlockSpec((TB, obs_dim), lambda i: (i, 0)),
                # weights / biases: VMEM-resident across the whole grid
                pl.BlockSpec((obs_dim, hidden), lambda i: (0, 0)),
                pl.BlockSpec((1, hidden), lambda i: (0, 0)),
                pl.BlockSpec((hidden, A), lambda i: (0, 0)),
                pl.BlockSpec((1, A), lambda i: (0, 0)),
            ],
            # block last dim == full array last dim (A), so no lane padding needed
            out_specs=pl.BlockSpec((TB, A), lambda i: (i, 0)),
        ),
        compiler_params=pltpu.CompilerParams(
            dimension_semantics=("parallel",),
            vmem_limit_bytes=32 << 20,
        ),
        cost_estimate=pl.CostEstimate(
            flops=flops, transcendentals=0, bytes_accessed=bytes_accessed
        ),
    )(observation, w1, b1, w3, b3)

    return out


def init_params(key, observation_dim, action_dim):
    """Deterministic init mimicking nn.Linear's U(-1/sqrt(fan_in), 1/sqrt(fan_in)).

    Weights are stored transposed relative to PyTorch ((in, out)) and in bf16;
    biases stay f32 (added after the f32 accumulate).
    """
    hidden = observation_dim // 2
    k1, k2, k3, k4 = jax.random.split(key, 4)
    bound1 = 1.0 / jnp.sqrt(observation_dim)
    bound3 = 1.0 / jnp.sqrt(hidden)
    w1 = jax.random.uniform(k1, (observation_dim, hidden), jnp.float32,
                            -bound1, bound1).astype(jnp.bfloat16)
    b1 = jax.random.uniform(k2, (1, hidden), jnp.float32, -bound1, bound1)
    w3 = jax.random.uniform(k3, (hidden, action_dim), jnp.float32,
                            -bound3, bound3).astype(jnp.bfloat16)
    b3 = jax.random.uniform(k4, (1, action_dim), jnp.float32, -bound3, bound3)
    return w1, b1, w3, b3


def _reference(observation, w1, b1, w3, b3):
    """Plain-JAX reference with the same bf16-in / f32-accumulate arithmetic."""
    xb = observation.astype(jnp.bfloat16)
    h = jnp.dot(xb, w1, preferred_element_type=jnp.float32) + b1
    h = jnp.maximum(h, 0.0)
    q = jnp.dot(h.astype(jnp.bfloat16), w3, preferred_element_type=jnp.float32)
    return q + b3


if __name__ == "__main__":
    observation_dim = 256   # must be even (fc1 maps to observation_dim // 2)
    action_dim = 8

    key = jax.random.PRNGKey(0)
    kp, kx1, kx2 = jax.random.split(key, 3)
    w1, b1, w3, b3 = init_params(kp, observation_dim, action_dim)

    # --- Pallas path: batch large enough to tile, ragged last block ---------
    batch = 200
    observation = jax.random.normal(
        kx1, (batch, observation_dim), jnp.float32).astype(jnp.bfloat16)
    q = jax.block_until_ready(dqn_forward(observation, w1, b1, w3, b3))
    ref = _reference(observation, w1, b1, w3, b3)
    assert q.shape == (batch, action_dim)
    assert jnp.allclose(q, ref, atol=2e-2, rtol=2e-2), (
        f"max abs diff = {jnp.max(jnp.abs(q - ref))}"
    )

    # --- small-batch fast path (per-step RL action selection, B=2) ----------
    obs_small = jax.random.normal(
        kx2, (2, observation_dim), jnp.float32).astype(jnp.bfloat16)
    q_small = jax.block_until_ready(dqn_forward(obs_small, w1, b1, w3, b3))
    ref_small = _reference(obs_small, w1, b1, w3, b3)
    assert q_small.shape == (2, action_dim)
    assert jnp.allclose(q_small, ref_small, atol=2e-2, rtol=2e-2), (
        f"max abs diff = {jnp.max(jnp.abs(q_small - ref_small))}"
    )

    print("KERNEL_OK")
</pallas_src>

<mosaic_0001>
module attributes {stable_mosaic.version = 11 : i64} {
  func.func @_dqn_forward_kernel(%arg0: i32, %arg1: memref<104x256xbf16, #tpu.memory_space<vmem>>, %arg2: memref<256x128xbf16, #tpu.memory_space<vmem>>, %arg3: memref<1x128xf32, #tpu.memory_space<vmem>>, %arg4: memref<128x8xbf16, #tpu.memory_space<vmem>>, %arg5: memref<1x8xf32, #tpu.memory_space<vmem>>, %arg6: memref<104x8xf32, #tpu.memory_space<vmem>>) attributes {dimension_semantics = [#tpu.dimension_semantics<parallel>], iteration_bounds = array<i64: 2>, scalar_prefetch = 0 : i64, scratch_operands = 0 : i64, tpu.core_type = #tpu.core_type<tc>, window_params = [{transform_indices = @transform_0, window_bounds = array<i64: 104, 256>}, {pipeline_mode = #tpu.pipeline_mode<synchronous>, transform_indices = @transform_1, window_bounds = array<i64: 256, 128>}, {pipeline_mode = #tpu.pipeline_mode<synchronous>, transform_indices = @transform_2, window_bounds = array<i64: 1, 128>}, {pipeline_mode = #tpu.pipeline_mode<synchronous>, transform_indices = @transform_3, window_bounds = array<i64: 128, 8>}, {pipeline_mode = #tpu.pipeline_mode<synchronous>, transform_indices = @transform_4, window_bounds = array<i64: 1, 8>}, {transform_indices = @transform_5, window_bounds = array<i64: 104, 8>}]} {
    %c0 = arith.constant 0 : index
    %c0_0 = arith.constant 0 : index
    %0 = vector.load %arg1[%c0, %c0_0] : memref<104x256xbf16, #tpu.memory_space<vmem>>, vector<104x256xbf16>
    %c0_1 = arith.constant 0 : index
    %c0_2 = arith.constant 0 : index
    %1 = vector.load %arg2[%c0_1, %c0_2] : memref<256x128xbf16, #tpu.memory_space<vmem>>, vector<256x128xbf16>
    %cst = arith.constant dense<0.000000e+00> : vector<104x128xf32>
    %2 = tpu.matmul %0, %1, %cst {dimension_numbers = #tpu.dot_dimension_numbers<[1], [0], [0], [1], [0, 0, 1, 1], [], []>} : vector<104x256xbf16>, vector<256x128xbf16>, vector<104x128xf32> -> vector<104x128xf32>
    %c0_3 = arith.constant 0 : index
    %c0_4 = arith.constant 0 : index
    %3 = vector.load %arg3[%c0_3, %c0_4] : memref<1x128xf32, #tpu.memory_space<vmem>>, vector<1x128xf32>
    %4 = vector.broadcast %3 : vector<1x128xf32> to vector<104x128xf32>
    %5 = arith.addf %2, %4 : vector<104x128xf32>
    %cst_5 = arith.constant 0.000000e+00 : f32
    %6 = vector.broadcast %cst_5 : f32 to vector<104x128xf32>
    %7 = arith.maximumf %5, %6 : vector<104x128xf32>
    %8 = arith.truncf %7 : vector<104x128xf32> to vector<104x128xbf16>
    %c0_6 = arith.constant 0 : index
    %c0_7 = arith.constant 0 : index
    %9 = vector.load %arg4[%c0_6, %c0_7] : memref<128x8xbf16, #tpu.memory_space<vmem>>, vector<128x8xbf16>
    %cst_8 = arith.constant dense<0.000000e+00> : vector<104x8xf32>
    %10 = tpu.matmul %8, %9, %cst_8 {dimension_numbers = #tpu.dot_dimension_numbers<[1], [0], [0], [1], [0, 0, 1, 1], [], []>} : vector<104x128xbf16>, vector<128x8xbf16>, vector<104x8xf32> -> vector<104x8xf32>
    %c0_9 = arith.constant 0 : index
    %c0_10 = arith.constant 0 : index
    %11 = vector.load %arg5[%c0_9, %c0_10] : memref<1x8xf32, #tpu.memory_space<vmem>>, vector<1x8xf32>
    %12 = vector.broadcast %11 : vector<1x8xf32> to vector<104x8xf32>
    %13 = arith.addf %10, %12 : vector<104x8xf32>
    %c0_11 = arith.constant 0 : index
    %c0_12 = arith.constant 0 : index
    %14 = vector.load %arg6[%c0_11, %c0_12] : memref<104x8xf32, #tpu.memory_space<vmem>>, vector<104x8xf32>
    tpu.vector_store %arg6[%c0_11, %c0_12], %13 {strides = array<i32>} : memref<104x8xf32, #tpu.memory_space<vmem>>, vector<104x8xf32>,
    return
  }
  func.func @transform_0(%arg0: i32) -> (i32, i32) {
    %c0_i32 = arith.constant 0 : i32
    %c0_i32_0 = arith.constant 0 : i32
    return %arg0, %c0_i32 : i32, i32
  }
  func.func @transform_1(%arg0: i32) -> (i32, i32) {
    %c0_i32 = arith.constant 0 : i32
    %c0_i32_0 = arith.constant 0 : i32
    %c0_i32_1 = arith.constant 0 : i32
    return %c0_i32, %c0_i32_0 : i32, i32
  }
  func.func @transform_2(%arg0: i32) -> (i32, i32) {
    %c0_i32 = arith.constant 0 : i32
    %c0_i32_0 = arith.constant 0 : i32
    %c0_i32_1 = arith.constant 0 : i32
    return %c0_i32, %c0_i32_0 : i32, i32
  }
  func.func @transform_3(%arg0: i32) -> (i32, i32) {
    %c0_i32 = arith.constant 0 : i32
    %c0_i32_0 = arith.constant 0 : i32
    %c0_i32_1 = arith.constant 0 : i32
    return %c0_i32, %c0_i32_0 : i32, i32
  }
  func.func @transform_4(%arg0: i32) -> (i32, i32) {
    %c0_i32 = arith.constant 0 : i32
    %c0_i32_0 = arith.constant 0 : i32
    %c0_i32_1 = arith.constant 0 : i32
    return %c0_i32, %c0_i32_0 : i32, i32
  }
  func.func @transform_5(%arg0: i32) -> (i32, i32) {
    %c0_i32 = arith.constant 0 : i32
    %c0_i32_0 = arith.constant 0 : i32
    return %arg0, %c0_i32 : i32, i32
  }
}

</mosaic_0001>

<bundles_post_ra>
// kernel: dqn_forward.1
= control target key start
LH: loop header
LB: loop body
LE: loop exit
PB: predicated region body
PF: predicated region fallthrough
CT: control target
= control target key end

     0   :  { %10 = vsyncpa [#allocation3], 0  ;;  %s1896_s0 = inlined_call_operand.hbm [shape: bf16[200,256], index: 0, kind: input, shape index: {}]   ;;  %s1897_s1 = inlined_call_operand.hbm [shape: bf16[256,128], index: 1, kind: input, shape index: {}]   ;;  %s1898_s2 = inlined_call_operand.vmem [shape: f32[1,128], index: 2, kind: input, shape index: {}]   ;;  %s1899_s3 = inlined_call_operand.vmem [shape: bf16[128,8], index: 3, kind: input, shape index: {}]   ;;  %s1900_s4 = inlined_call_operand.vmem [shape: f32[1,8], index: 4, kind: input, shape index: {}]   ;;  %s1901_s5 = inlined_call_operand.vmem [shape: f32[200,8], index: 5, kind: output, shape index: {}]  }
   0x1   :  { %12 = vsyncpa [#allocation3 + $0x1], 0 }
   0x2   :  { %13 = vsyncpa [#allocation5], 0  ;;  %s1574_s18 = smov 0   ;;  %s1576_s19 = smov 0  }
   0x3   :  { %s1578_s20 = smov 0   ;;  %s1580_s21 = smov 0  }
   0x4 LB: > { %s1593_s22 = sadd.s32 4294967295, %s1504_s21   ;;  %s1596_s23 = sadd.s32 1, %s1504_s21   ;;  %s1504_s21 = sphi %s1580_s21, %s1918_s21   ;;  %s1500_s20 = sphi %s1578_s20, %s1917_s20   ;;  %s1496_s19 = sphi %s1576_s19, %s1916_s19   ;;  %s1492_s18 = sphi %s1574_s18, %s1915_s18  }
   0x5   : > { %s23_s24 = ssub.s32 %s1504_s21, %s1596_s23  ;;  %s26_s25 = sadd.s32 1, %s1500_s20 }
   0x6   : > { %p24_p0 = scmp.eq.s32.totalorder %s23_s24, 0  ;;  %p33_p1 = scmp.ne.s32.totalorder %s1500_s20, %s1496_s19 }
   0x7   : > { %p34_p2 = scmp.eq.s32.totalorder %s1504_s21, 0  ;;  %p39_p3 = scmp.ne.s32.totalorder %s1496_s19, %s1492_s18 }
   0x8   : > { %s1606_s26 = scalar_select %p24_p0, %s1500_s20, %s26_s25  }
   0x9   : > { %p1608_p4 = por %p34_p2, %p33_p1  ;;  %p1902_p5 = scmp.eq.s32.totalorder %s1593_s22, 0 }
   0xa   : > { %p147_p6 = scmp.eq.s32.totalorder %s1593_s22, 1  ;;  %p1009_p7 = scmp.ge.s32.totalorder %s1504_s21, 1 }
   0xb   : > { %p1617_p8 = por %p1902_p5, %p39_p3  ;;  %p160_p9 = scmp.lt.s32.totalorder %s1504_s21, 3 }
   0xc   : > { %p1622_p10 = por %p147_p6, %p33_p1  ;;  %s171_s8 = sshll.u32 %s1897_s1, 4  ;;  %s172_s8 = int_to_ptr.hbm [resolvable:$true] %s171_s8 }
   0xd   : > { %p1626_p11 = pnand %p1009_p7, %p160_p9  ;;  %s1538_s9 = smov [#allocation4]  }
   0xe   : > { %s173_s10 = sshll.u32 %s1538_s9, 4  ;;  %s1539_s11 = smov 64   ;;  %s174_s10 = int_to_ptr.vmem [resolvable:$true] %s173_s10 }
   0xf   : > { %p1249_p12 = pneg %p1626_p11  ;;  %s1540_s12 = smov 4  }
  0x10   : > { %p1011_p0 = scmp.ge.s32.totalorder %s1504_s21, 2 }
  0x11   : > { %p1250_p13 = pnand %p1249_p12, %p1902_p5 }
  0x12   : > { %192 = sbr.rel (%p1011_p0) target bundleno = 61 (0x3d), region = 32 }
  0x13   : > { %1252 = dma.hbm_to_vmem [thread:$0]  (!%p1250_p13), %s172_s8, 2048, %s174_s10, [#allocation5], %s1539_s11, %s1539_s11, %s1540_s12  }
  0x17   : > { %195 = sbr.rel (!%p1608_p4) target bundleno = 61 (0x3d), region = 36  ;;  %s196_s13 = sand.u32 (%p1608_p4), 1, %s1500_s20  }
  0x18   : > { %s201_s14 = smul.u32 (%p1608_p4), 13, %s1504_s21  ;;  %s1645_s25 = scalar_lea.sflag (%p1608_p4), [#allocation3], %s196_s13 }
  0x19   : > { %s1242_s15 = smul.u32 (%p1608_p4), 104, %s196_s13 }
  0x1a   : > { %s202_s16 = ssub.s32 (%p1608_p4), 25, %s201_s14 }
  0x1b   : > { %p203_p1 = scmp.lt.s32.totalorder (%p1608_p4), %s202_s16, 13  ;;  %s200_s6 = scalar_lea.vmem (%p1608_p4), [#allocation2], %s1242_s15 }
  0x1d   : > { %s1920_s16 = smov (!%p203_p1, %s202_s16), 13 }
  0x1e   : > { %s1177_s17 = sshll.u32 %s1920_s16, 3 }
  0x1f   : > { %s207_s18 = ssub.s32 104, %s1177_s17 }
  0x20   : > { %s208_s24 = sshll.u32 %s207_s18, 4 }
  0x21   : > { %209 = vsyncadd %s1645_s25, %s208_s24  ;;  %p1648_p2 = scmp.ne.s32.totalorder %s1177_s17, 0  ;;  %s1217_s7 = smul.u32 104, %s1504_s21 }
  0x22   : > { %s1653_s8 = sshll.u32 %s200_s6, 4  ;;  %s1018_s9 = sshll.u32 %s1920_s16, 7  ;;  %s218_s8 = int_to_ptr.vmem [resolvable:$true] %s1653_s8 }
  0x23   : > { %s213_s12 = scalar_lea.hbm %s1896_s0, %s1217_s7  ;;  %s1397_s15 = sshrl.u32 %s1018_s9, 4 }
  0x24   : > { %s215_s13 = sshll.u32 %s213_s12, 4  ;;  %s1406_s24 = scalar_lea.hbm %s1896_s0, 200  ;;  %s1660_s13 = int_to_ptr.hbm [resolvable:$true] %s215_s13 }
  0x25   : > { %s1395_s14 = sshra.s32 %s1660_s13, 4  ;;  %s1396_s14 = int_to_ptr.hbm [resolvable:$true] %s1395_s14 }
  0x26   : > { %s1402_s17 = scalar_lea.hbm %s1396_s14, %s1397_s15  ;;  %p1407_p7 = scmp.lt.s32.totalorder %s1396_s14, %s1896_s0 }
  0x27   : > { %p1403_p3 = scmp.ne.s32.totalorder %s1396_s14, %s1402_s17  ;;  %p1408_p9 = scmp.lt.s32.totalorder %s1406_s24, %s1402_s17 }
  0x29   : > { %p1404_p4 = pnand %p1403_p3, %p1648_p2  ;;  %p1409_p12 = por %p1408_p9, %p1407_p7 }
  0x2b   : > { %p1405_p6 = pneg %p1404_p4 }
  0x2d   : > { %p1410_p13 = pnand %p1409_p12, %p1405_p6 }
  0x2f   : > { %1413 = shalt.err (!%p1410_p13)
}
  0x30   : > { %s1414_s10 = sshra.s32 %s218_s8, 4  ;;  %s1541_s12 = smov [#allocation2]   ;;  %s1415_s10 = int_to_ptr.vmem [resolvable:$true] %s1414_s10 }
  0x31   : > { %s1421_s11 = scalar_lea.vmem %s1415_s10, %s1397_s15  ;;  %s1425_s21 = scalar_lea.vmem %s1541_s12, 208 }
  0x32   : > { %p1422_p0 = scmp.ne.s32.totalorder %s1415_s10, %s1421_s11  ;;  %p1427_p4 = scmp.lt.s32.totalorder %s1425_s21, %s1421_s11 }
  0x34   : > { %p1423_p1 = pnand %p1422_p0, %p1648_p2 }
  0x36   : > { %p1424_p3 = pneg %p1423_p1 }
  0x38   : > { %p1429_p5 = pnand %p1427_p4, %p1424_p3 }
  0x3a   : > { %1432 = shalt.err (!%p1429_p5)
}
  0x3b   : > { %s1542_s14 = smov 128   ;;  %s1543_s17 = smov 8  }
  0x3c   : > { %223 = dma.hbm_to_vmem [thread:$0]  (%p1648_p2), %s1660_s13, %s1018_s9, %s218_s8, %s1645_s25, %s1542_s14, %s1542_s14, %s1543_s17  }
  0x3d PF: > { %229 = sbr.rel (%p1626_p11) target bundleno = 530 (0x212), region = 40  ;;  %s231_s15 = sand.u32 (!%p1626_p11), 1, %s1496_s19  }
  0x3e   : > { %s1688_s18 = smul.u32 (!%p1626_p11), 104, %s231_s15  ;;  %s232_s24 = scalar_lea.sflag (!%p1626_p11), [#allocation3], %s231_s15 }
  0x40   : > { %s1691_s6 = scalar_lea.vmem (!%p1626_p11), [#allocation2], %s1688_s18 }
  0x42   : > { %1483 = dma.done.wait (%p1617_p8), %s232_s24, 1664  }
  0x43   : > { %1485 = vsyncadd (%p1617_p8), %s232_s24, 4294965632  ;;  %p1908_p5 = scmp.eq.s32.totalorder %s1593_s22, 0 }
  0x45   : > { %1487 = dma.done.wait (%p1908_p5), [#allocation5], 2048   ;;  %p1909_p2 = pmov %p1908_p5 }
  0x46   : > { %v1199_v0 = vld [vmem:[#allocation4 + $0x38] sm:$0xff]  ;;  %v1198_v2 = vld [vmem:[#allocation4 + $0x30] sm:$0xff]  ;;  %v1197_v4 = vld [vmem:[#allocation4 + $0x28] sm:$0xff]  ;;  %vm707_vm0 = vcmask 64512   ;;  %s1772_s16 = scalar_lea.vmem [#allocation6], %s1688_s18   ;;  %s728_s18 = smul.u32 (%p1622_p10), 13, %s1593_s22 }
  0x47   : > { %1489 = vsyncadd (%p1909_p2), [#allocation5], 4294965248  ;;  %v1207_v1 = vld [vmem:[#allocation4 + $0x78] sm:$0xff]  ;;  %1218 = vmatpush.bf16.msra.mxu3 %v1199_v0  ;;  %v1206_v3 = vld [vmem:[#allocation4 + $0x70] sm:$0xff]  ;;  %490 = vmatpush.bf16.msra.mxu0 %v1199_v0  ;;  %s1216_s25 = smul.u32 (%p1622_p10), 104, %s1593_s22 }
  0x48   : > { %1226 = vmatpush.bf16.msra.mxu1 %v1207_v1  ;;  %v1205_v5 = vld [vmem:[#allocation4 + $0x68] sm:$0xff]  ;;  %v1196_v6 = vld [vmem:[#allocation4 + $0x20] sm:$0xff]  ;;  %v1195_v8 = vld [vmem:[#allocation4 + $0x18] sm:$0xff]  ;;  %s729_s27 = ssub.s32 (%p1622_p10), 25, %s728_s18 }
  0x49   : > { %v1204_v7 = vld [vmem:[#allocation4 + $0x60] sm:$0xff]  ;;  %v1203_v9 = vld [vmem:[#allocation4 + $0x58] sm:$0xff]  ;;  %v1194_v10 = vld [vmem:[#allocation4 + $0x10] sm:$0xff]  ;;  %p730_p8 = scmp.lt.s32.totalorder (%p1622_p10), %s729_s27, 13  ;;  %s1807_s13 = scalar_lea.vmem (%p1622_p10), %s1901_s5, %s1216_s25  }
  0x4a   : > { %v1202_v11 = vld [vmem:[#allocation4 + $0x50] sm:$0xff]  ;;  %v1193_v12 = vld [vmem:[#allocation4 + $0x8] sm:$0xff]  ;;  %v1192_v14 = vld [vmem:[#allocation4] sm:$0xff] }
  0x4b   : > { %1219 = vmatpush.bf16.msra.mxu3 %v1198_v2  ;;  %491 = vmatpush.bf16.msra.mxu0 %v1198_v2  ;;  %v1201_v13 = vld [vmem:[#allocation4 + $0x48] sm:$0xff]  ;;  %v1200_v15 = vld [vmem:[#allocation4 + $0x40] sm:$0xff]  ;;  %v1023_v22 = vld [vmem:[%s1691_s6] sm:$0xf] }
  0x4c   : > { %1227 = vmatpush.bf16.msra.mxu1 %v1206_v3  ;;  %v1031_v16 = vld [vmem:[%s1691_s6 + $0x10] sm:$0xf]  ;;  %v1183_v17 = vld [vmem:[%s1691_s6 + $0x14] sm:$0xf0]  ;;  %v1182_v18 = vld [vmem:[%s1691_s6 + $0x14] sm:$0xf] }
  0x4d   : > { %v1033_v19 = vld [vmem:[%s1691_s6 + $0x18] sm:$0xf0]  ;;  %v1032_v20 = vor.u32 %v1183_v17, %v1031_v16  ;;  %v1181_v23 = vld [vmem:[%s1691_s6 + $0x4] sm:$0xf0]  ;;  %v1039_v25 = vld [vmem:[%s1691_s6 + $0x20] sm:$0xf] }
  0x4e   : > { %v1036_v21 = vor.u32 %v1182_v18, %v1033_v19  ;;  %v1024_v24 = vor.u32 %v1181_v23, %v1023_v22  ;;  %v1185_v26 = vld [vmem:[%s1691_s6 + $0x24] sm:$0xf0]  ;;  %v1184_v27 = vld [vmem:[%s1691_s6 + $0x24] sm:$0xf]  ;;  %v1041_v28 = vld [vmem:[%s1691_s6 + $0x28] sm:$0xf0] }
  0x4f   : > { %1220 = vmatpush.bf16.msra.mxu3 %v1197_v4  ;;  %492 = vmatpush.bf16.msra.mxu0 %v1197_v4  ;;  %v1040_v29 = vor.u32 %v1185_v26, %v1039_v25  ;;  %v1044_v30 = vor.u32 %v1184_v27, %v1041_v28  ;;  %v1180_v31 = vld [vmem:[%s1691_s6 + $0x4] sm:$0xf]  ;;  %v1025_v32 = vld [vmem:[%s1691_s6 + $0x8] sm:$0xf0]  ;;  %v1047_v33 = vld [vmem:[%s1691_s6 + $0x30] sm:$0xf] }
  0x50   : > { %1228 = vmatpush.bf16.msra.mxu1 %v1205_v5  ;;  %v1187_v34 = vld [vmem:[%s1691_s6 + $0x34] sm:$0xf0]  ;;  %v1186_v35 = vld [vmem:[%s1691_s6 + $0x34] sm:$0xf]  ;;  %v1049_v36 = vld [vmem:[%s1691_s6 + $0x38] sm:$0xf0]  ;;  %v1028_v37 = vor.u32 %v1180_v31, %v1025_v32 }
  0x51   : > { %v1048_v38 = vor.u32 %v1187_v34, %v1047_v33  ;;  %v1052_v39 = vor.u32 %v1186_v35, %v1049_v36  ;;  %v1055_v40 = vld [vmem:[%s1691_s6 + $0x40] sm:$0xf]  ;;  %v1189_v41 = vld [vmem:[%s1691_s6 + $0x44] sm:$0xf0]  ;;  %v1188_v42 = vld [vmem:[%s1691_s6 + $0x44] sm:$0xf] }
  0x52   : > { %v1057_v43 = vld [vmem:[%s1691_s6 + $0x48] sm:$0xf0]  ;;  %v1056_v44 = vor.u32 %v1189_v41, %v1055_v40  ;;  %v1215_v46 = vld [vmem:[%s1899_s3 + $0x38] sm:$0xff]  ;;  %v290_v54 = vld [vmem:[%s1691_s6 + $0x60] sm:$0xff] }
  0x53   : > { %1221 = vmatpush.bf16.msra.mxu3 %v1196_v6  ;;  %493 = vmatpush.bf16.msra.mxu0 %v1196_v6  ;;  %v1060_v45 = vor.u32 %v1188_v42, %v1057_v43  ;;  %v1214_v47 = vld [vmem:[%s1899_s3 + $0x30] sm:$0xff]  ;;  %v1191_v49 = vld [vmem:[%s1691_s6 + $0x54] sm:$0xf0]  ;;  %v1065_v51 = vld [vmem:[%s1691_s6 + $0x58] sm:$0xf0]  ;;  %v364_v55 = vunpack.c.l.b16 %v290_v54  ;;  %v365_v56 = vunpack.c.h.b16 %v290_v54 }
  0x54   : > { %1229 = vmatpush.bf16.msra.mxu1 %v1204_v7  ;;  %1234 = vmatpush.bf16.msra.mxu2 %v1215_v46  ;;  %v1063_v48 = vld [vmem:[%s1691_s6 + $0x50] sm:$0xf]  ;;  %v1190_v50 = vld [vmem:[%s1691_s6 + $0x54] sm:$0xf]  ;;  %v1213_v59 = vld [vmem:[%s1899_s3 + $0x28] sm:$0xff] }
  0x55   : > { %v1064_v52 = vor.u32 %v1191_v49, %v1063_v48  ;;  %v1068_v53 = vor.u32 %v1190_v50, %v1065_v51  ;;  %v378_v57 = vpack.c.b16 %v364_v55, %v364_v55  ;;  %v379_v58 = vpack.c.b16 %v365_v56, %v365_v56  ;;  %v1212_v60 = vld [vmem:[%s1899_s3 + $0x20] sm:$0xff]  ;;  %v1211_v61 = vld [vmem:[%s1899_s3 + $0x18] sm:$0xff]  ;;  %v1210_v62 = vld [vmem:[%s1899_s3 + $0x10] sm:$0xff] }
  0x56   : > { %v1209_v63 = vld [vmem:[%s1899_s3 + $0x8] sm:$0xff]  ;;  %v1208_v0 = vld [vmem:[%s1899_s3] sm:$0xff] }
  0x57   : > { %1222 = vmatpush.bf16.msra.mxu3 %v1195_v8  ;;  %494 = vmatpush.bf16.msra.mxu0 %v1195_v8 }
  0x58   : > { %1230 = vmatpush.bf16.msra.mxu1 %v1203_v9  ;;  %1235 = vmatpush.bf16.msra.mxu2 %v1214_v47 }
  0x5b   : > { %1223 = vmatpush.bf16.msra.mxu3 %v1194_v10  ;;  %495 = vmatpush.bf16.msra.mxu0 %v1194_v10 }
  0x5c   : > { %1231 = vmatpush.bf16.msra.mxu1 %v1202_v11  ;;  %1236 = vmatpush.bf16.msra.mxu2 %v1213_v59 }
  0x5f   : > { %1224 = vmatpush.bf16.msra.mxu3 %v1193_v12  ;;  %496 = vmatpush.bf16.msra.mxu0 %v1193_v12 }
  0x60   : > { %1232 = vmatpush.bf16.msra.mxu1 %v1201_v13  ;;  %1237 = vmatpush.bf16.msra.mxu2 %v1212_v60 }
  0x63   : > { %1225 = vmatpush.bf16.msra.mxu3 %v1192_v14  ;;  %497 = vmatpush.bf16.msra.mxu0 %v1192_v14 }
  0x64   : > { %1233 = vmatpush.bf16.msra.mxu1 %v1200_v15  ;;  %1238 = vmatpush.bf16.msra.mxu2 %v1211_v61 }
  0x66   : > { %503 = vmatmul.bf16.vlgmr.msra.gmra.mxu3 %v1032_v20  ;;  %498 = vmatmul.bf16.vlgmr.msra.gmra.mxu0 %v1024_v24 }
  0x67   : > { %533 = vmatpush.bf16.msrb.mxu0 %v1207_v1  ;;  %546 = vmatmul.bf16.vlgmr.msra.gmra.mxu1 %v1036_v21 }
  0x68   : > { %1239 = vmatpush.bf16.msra.mxu2 %v1210_v62 }
  0x6b   : > { %534 = vmatpush.bf16.msrb.mxu0 %v1206_v3  ;;  %v1753_v3 = vld [vmem:[%s1898_s2] ss:$0 sm:$0xff] }
  0x6c   : > { %1240 = vmatpush.bf16.msra.mxu2 %v1209_v63 }
  0x6f   : > { %535 = vmatpush.bf16.msrb.mxu0 %v1205_v5 }
  0x70   : > { %1241 = vmatpush.bf16.msra.mxu2 %v1208_v0 }
  0x73   : > { %536 = vmatpush.bf16.msrb.mxu0 %v1204_v7 }
  0x76   : > { %508 = vmatmul.bf16.gmra.mxu3 %v1040_v29 }
  0x77   : > { %537 = vmatpush.bf16.msrb.mxu0 %v1203_v9  ;;  %551 = vmatmul.bf16.gmra.mxu1 %v1044_v30 }
  0x7b   : > { %538 = vmatpush.bf16.msrb.mxu0 %v1202_v11 }
  0x7f   : > { %539 = vmatpush.bf16.msrb.mxu0 %v1201_v13 }
  0x83   : > { %540 = vmatpush.bf16.msrb.mxu0 %v1200_v15 }
  0x86   : > { %541 = vmatmul.bf16.vlgmr.msrb.gmra.mxu0 %v1028_v37  ;;  %513 = vmatmul.bf16.gmra.mxu3 %v1048_v38 }
  0x87   : > { %556 = vmatmul.bf16.gmra.mxu1 %v1052_v39  ;;  %664 = vmatpush.bf16.msra.mxu0 %v1215_v46 }
  0x8b   : > { %665 = vmatpush.bf16.msra.mxu0 %v1214_v47 }
  0x8f   : > { %666 = vmatpush.bf16.msra.mxu0 %v1213_v59 }
  0x93   : > { %667 = vmatpush.bf16.msra.mxu0 %v1212_v60 }
  0x96   : > { %518 = vmatmul.bf16.gmra.mxu3 %v1056_v44 }
  0x97   : > { %561 = vmatmul.bf16.gmra.mxu1 %v1060_v45  ;;  %668 = vmatpush.bf16.msra.mxu0 %v1211_v61 }
  0x9b   : > { %669 = vmatpush.bf16.msra.mxu0 %v1210_v62 }
  0x9f   : > { %670 = vmatpush.bf16.msra.mxu0 %v1209_v63 }
  0xa3   : > { %671 = vmatpush.bf16.msra.mxu0 %v1208_v0 }
  0xa6   : > { %523 = vmatmul.bf16.gmra.mxu3 %v1064_v52 }
  0xa7   : > { %566 = vmatmul.bf16.gmra.mxu1 %v1068_v53 }
  0xb6   : > { %528 = vmatmul.bf16.gmra.mxu3 %v378_v57 }
  0xb7   : > { %571 = vmatmul.bf16.gmra.mxu1 %v379_v58 }
  0xe3   : > { %v499_v6 = vpop.f32.mrf.mxu0 }
  0xe4   : > { %v547_v1 = vpop.f32.mrf.mxu1  ;;  %v500_v23 = vadd.f32 %v1753_v3, %v499_v6 }
  0xe9   : > { %v504_v2 = vpop.f32.mrf.mxu3 }
  0xea   : > { %v505_v5 = vadd.f32 %v1753_v3, %v504_v2 }
  0xeb   : > { %v501_v14 = vpop.f32.mrf.mxu0 }
  0xec   : > { %v549_v4 = vpop.f32.mrf.mxu1  ;;  %v548_v8 = vadd.f32 %v547_v1, %v505_v5  ;;  %v502_v28 = vadd.f32 %v1753_v3, %v501_v14 }
  0xee   : > { %v578_v12 = vmax.f32 %v548_v8, 0.0 }
  0xf1   : > { %v506_v7 = vpop.f32.mrf.mxu3 }
  0xf2   : > { %v507_v9 = vadd.f32 %v1753_v3, %v506_v7 }
  0xf4   : > { %v552_v10 = vpop.f32.mrf.mxu1  ;;  %v550_v11 = vadd.f32 %v549_v4, %v507_v9 }
  0xf6   : > { %v579_v13 = vmax.f32 %v550_v11, 0.0 }
  0xf8   : > { %v590_v15 = vpack.c.bf16 %v579_v13, %v578_v12  ;;  %v1358_v13 = vld [vmem:[%s1900_s4] ss:$0 sm:$0xff] }
  0xf9   : > { %v509_v16 = vpop.f32.mrf.mxu3 }
  0xfa   : > { %677 = vmatmul.bf16.vlgmr.msra.gmra.mxu2 %v590_v15  ;;  %v510_v18 = vadd.f32 %v1753_v3, %v509_v16 }
  0xfc   : > { %v554_v17 = vpop.f32.mrf.mxu1  ;;  %v553_v21 = vadd.f32 %v552_v10, %v510_v18 }
  0xfe   : > { %v580_v26 = vmax.f32 %v553_v21, 0.0 }
 0x101   : > { %v511_v19 = vpop.f32.mrf.mxu3 }
 0x102   : > { %v512_v22 = vadd.f32 %v1753_v3, %v511_v19 }
 0x103   : > { %v542_v20 = vpop.f32.mrf.mxu0 }
 0x104   : > { %v557_v24 = vpop.f32.mrf.mxu1  ;;  %v555_v25 = vadd.f32 %v554_v17, %v512_v22  ;;  %v543_v29 = vadd.f32 %v542_v20, %v500_v23 }
 0x106   : > { %v581_v27 = vmax.f32 %v555_v25, 0.0  ;;  %v576_v33 = vmax.f32 %v543_v29, 0.0 }
 0x108   : > { %v591_v30 = vpack.c.bf16 %v581_v27, %v580_v26 }
 0x109   : > { %v514_v31 = vpop.f32.mrf.mxu3 }
 0x10a   : > { %682 = vmatmul.bf16.gmra.mxu2 %v591_v30  ;;  %v515_v37 = vadd.f32 %v1753_v3, %v514_v31 }
 0x10b   : > { %v544_v32 = vpop.f32.mrf.mxu0 }
 0x10c   : > { %v545_v34 = vadd.f32 %v544_v32, %v502_v28  ;;  %v559_v35 = vpop.f32.mrf.mxu1  ;;  %v558_v40 = vadd.f32 %v557_v24, %v515_v37 }
 0x10e   : > { %v577_v36 = vmax.f32 %v545_v34, 0.0  ;;  %v582_v44 = vmax.f32 %v558_v40, 0.0 }
 0x110   : > { %v589_v38 = vpack.c.bf16 %v577_v36, %v576_v33 }
 0x111   : > { %v516_v39 = vpop.f32.mrf.mxu3 }
 0x112   : > { %672 = vmatmul.bf16.vlgmr.msra.gmra.mxu0 %v589_v38  ;;  %v517_v41 = vadd.f32 %v1753_v3, %v516_v39 }
 0x114   : > { %v562_v42 = vpop.f32.mrf.mxu1  ;;  %v560_v43 = vadd.f32 %v559_v35, %v517_v41 }
 0x116   : > { %v583_v45 = vmax.f32 %v560_v43, 0.0 }
 0x118   : > { %v592_v46 = vpack.c.bf16 %v583_v45, %v582_v44 }
 0x119   : > { %v519_v47 = vpop.f32.mrf.mxu3 }
 0x11a   : > { %687 = vmatmul.bf16.gmra.mxu2 %v592_v46  ;;  %v520_v49 = vadd.f32 %v1753_v3, %v519_v47 }
 0x11c   : > { %v564_v48 = vpop.f32.mrf.mxu1  ;;  %v563_v51 = vadd.f32 %v562_v42, %v520_v49 }
 0x11e   : > { %v584_v55 = vmax.f32 %v563_v51, 0.0 }
 0x121   : > { %v521_v50 = vpop.f32.mrf.mxu3 }
 0x122   : > { %v522_v52 = vadd.f32 %v1753_v3, %v521_v50 }
 0x124   : > { %v567_v53 = vpop.f32.mrf.mxu1  ;;  %v565_v54 = vadd.f32 %v564_v48, %v522_v52 }
 0x126   : > { %v585_v56 = vmax.f32 %v565_v54, 0.0 }
 0x128   : > { %v593_v57 = vpack.c.bf16 %v585_v56, %v584_v55 }
 0x129   : > { %v524_v58 = vpop.f32.mrf.mxu3 }
 0x12a   : > { %692 = vmatmul.bf16.gmra.mxu2 %v593_v57  ;;  %v525_v60 = vadd.f32 %v1753_v3, %v524_v58 }
 0x12c   : > { %v569_v59 = vpop.f32.mrf.mxu1  ;;  %v568_v62 = vadd.f32 %v567_v53, %v525_v60 }
 0x12e   : > { %v586_v2 = vmax.f32 %v568_v62, 0.0 }
 0x131   : > { %v526_v61 = vpop.f32.mrf.mxu3 }
 0x132   : > { %v527_v63 = vadd.f32 %v1753_v3, %v526_v61 }
 0x134   : > { %v572_v0 = vpop.f32.mrf.mxu1  ;;  %v570_v1 = vadd.f32 %v569_v59, %v527_v63 }
 0x136   : > { %v587_v4 = vmax.f32 %v570_v1, 0.0 }
 0x138   : > { %v594_v5 = vpack.c.bf16 %v587_v4, %v586_v2 }
 0x139   : > { %v529_v6 = vpop.f32.mrf.mxu3 }
 0x13a   : > { %v530_v7 = vadd.f32 %v1753_v3, %v529_v6  ;;  %697 = vmatmul.bf16.gmra.mxu2 %v594_v5 }
 0x13c   : > { %v574_v8 = vpop.f32.mrf.mxu1  ;;  %v573_v9 = vadd.f32 %v572_v0, %v530_v7 }
 0x13e   : > { %v588_v11 = vmax.f32 %v573_v9, 0.0 }
 0x140   : > { %v595_v12 = vpack.c.bf16 %v588_v11, %v588_v11 }
 0x141   : > { %v531_v10 = vpop.f32.mrf.mxu3 }
 0x14a   : > { %702 = vmatmul.bf16.gmra.mxu2 %v595_v12 }
 0x17d   : > { %v678_v14 = vpop.f32.mrf.mxu2 }
 0x17e   : > { %v679_v15 = vadd.f32 %v1358_v13, %v678_v14 }
 0x180   : > { %710 = vst.msk [vmem:[%s1772_s16 + $0x10] sm:$0xff] %vm707_vm0, %v679_v15 }
 0x185   : > { %v680_v3 = vpop.f32.mrf.mxu2 }
 0x186   : > { %v681_v16 = vadd.f32 %v1358_v13, %v680_v3 }
 0x188   : > { %711 = vst.msk [vmem:[%s1772_s16 + $0x18] sm:$0xff] %vm707_vm0, %v681_v16 }
 0x18d   : > { %v683_v17 = vpop.f32.mrf.mxu2 }
 0x18e   : > { %v684_v19 = vadd.f32 %v1358_v13, %v683_v17 }
 0x18f   : > { %v673_v18 = vpop.f32.mrf.mxu0 }
 0x190   : > { %v674_v20 = vadd.f32 %v1358_v13, %v673_v18  ;;  %712 = vst.msk [vmem:[%s1772_s16 + $0x20] sm:$0xff] %vm707_vm0, %v684_v19 }
 0x192   : > { %708 = vst.msk [vmem:[%s1772_s16] sm:$0xff] %vm707_vm0, %v674_v20 }
 0x195   : > { %v685_v21 = vpop.f32.mrf.mxu2 }
 0x196   : > { %v686_v23 = vadd.f32 %v1358_v13, %v685_v21 }
 0x197   : > { %v675_v22 = vpop.f32.mrf.mxu0 }
 0x198   : > { %v676_v24 = vadd.f32 %v1358_v13, %v675_v22  ;;  %713 = vst.msk [vmem:[%s1772_s16 + $0x28] sm:$0xff] %vm707_vm0, %v686_v23 }
 0x19a   : > { %709 = vst.msk [vmem:[%s1772_s16 + $0x8] sm:$0xff] %vm707_vm0, %v676_v24 }
 0x19d   : > { %v688_v25 = vpop.f32.mrf.mxu2 }
 0x19e   : > { %v689_v26 = vadd.f32 %v1358_v13, %v688_v25 }
 0x1a0   : > { %714 = vst.msk [vmem:[%s1772_s16 + $0x30] sm:$0xff] %vm707_vm0, %v689_v26 }
 0x1a5   : > { %v690_v27 = vpop.f32.mrf.mxu2 }
 0x1a6   : > { %v691_v28 = vadd.f32 %v1358_v13, %v690_v27 }
 0x1a8   : > { %715 = vst.msk [vmem:[%s1772_s16 + $0x38] sm:$0xff] %vm707_vm0, %v691_v28 }
 0x1ad   : > { %v693_v29 = vpop.f32.mrf.mxu2 }
 0x1ae   : > { %v694_v30 = vadd.f32 %v1358_v13, %v693_v29 }
 0x1b0   : > { %716 = vst.msk [vmem:[%s1772_s16 + $0x40] sm:$0xff] %vm707_vm0, %v694_v30 }
 0x1b5   : > { %v695_v31 = vpop.f32.mrf.mxu2 }
 0x1b6   : > { %v696_v32 = vadd.f32 %v1358_v13, %v695_v31 }
 0x1b8   : > { %717 = vst.msk [vmem:[%s1772_s16 + $0x48] sm:$0xff] %vm707_vm0, %v696_v32 }
 0x1bd   : > { %v698_v33 = vpop.f32.mrf.mxu2 }
 0x1be   : > { %v699_v34 = vadd.f32 %v1358_v13, %v698_v33 }
 0x1c0   : > { %718 = vst.msk [vmem:[%s1772_s16 + $0x50] sm:$0xff] %vm707_vm0, %v699_v34 }
 0x1c5   : > { %v700_v35 = vpop.f32.mrf.mxu2 }
 0x1c6   : > { %v701_v36 = vadd.f32 %v1358_v13, %v700_v35 }
 0x1c8   : > { %719 = vst.msk [vmem:[%s1772_s16 + $0x58] sm:$0xff] %vm707_vm0, %v701_v36 }
 0x1cd   : > { %v703_v37 = vpop.f32.mrf.mxu2 }
 0x1ce   : > { %v704_v38 = vadd.f32 %v1358_v13, %v703_v37 }
 0x1d0   : > { %720 = vst.msk [vmem:[%s1772_s16 + $0x60] sm:$0xff] %vm707_vm0, %v704_v38 }
 0x1d1   : > { %727 = sbr.rel (!%p1622_p10) target bundleno = 530 (0x212), region = 52 }
 0x1d5   : > { %v705_v39 = vpop.f32.mrf.mxu2 }
 0x1d6   : > { %s1922_s27 = smov (!%p730_p8, %s729_s27), 13 }
 0x1d7   : > { %s1165_s7 = sshll.u32 %s1922_s27, 3 }
 0x1d8   : > { %p1168_p11 = scmp.eq.s32.totalorder %s1165_s7, 0 }
 0x1d9   : > { %1359 = sdivrem.u32 (!%p1168_p11), %s1922_s27, 13 }
 0x1da   : > { %738 = sbr.rel (%p1168_p11) target bundleno = 530 (0x212), region = 56 }
 0x1e2   : > { %s1813_s29 = spop.drf %1359 }
 0x1e3   : > { %s1361_s10 = spop.drf %1359  ;;  %p1169_p10 = scmp.le.s32.totalorder %s1813_s29, 0 }
 0x1e4   : > { %s1910_s22 = smov (!%p1169_p10), %s1807_s13  ;;  %s1911_s11 = smov (!%p1169_p10), %s1772_s16 }
 0x1e5   : > { %952 = sbr.rel (%p1169_p10) target bundleno = 504 (0x1f8), region = 138  ;;  %s1822_s12 = smov (!%p1169_p10), 0  }
 0x1e6   : > { %s1824_s21 = smov (!%p1169_p10), 0  }
 0x1ea LB: >> { %v827_v40 = vld [vmem:[%s1512_s11] sm:$0xff]  ;;  %v829_v41 = vld [vmem:[%s1512_s11 + $0x8] sm:$0xff]  ;;  %v831_v42 = vld [vmem:[%s1512_s11 + $0x10] sm:$0xff]  ;;  %s853_s14 = sadd.s32 1, %s1516_s12  ;;  %s821_s21 = sadd.s32 1, %s1520_s21   ;;  %s1520_s21 = sphi %s1824_s21, %s821_s21   ;;  %s1516_s12 = sphi %s1822_s12, %s1914_s12   ;;  %s1512_s11 = sphi %s1911_s11, %s1913_s11   ;;  %s1508_s22 = sphi %s1910_s22, %s1912_s22  }
 0x1eb   : >> { %828 = vst [vmem:[%s1508_s22] sm:$0xff] %v827_v40  ;;  %v833_v43 = vld [vmem:[%s1512_s11 + $0x18] sm:$0xff]  ;;  %p854_p6 = scmp.ge.s32.totalorder %s853_s14, %s1813_s29  ;;  %v835_v44 = vld [vmem:[%s1512_s11 + $0x20] sm:$0xff]  ;;  %v837_v45 = vld [vmem:[%s1512_s11 + $0x28] sm:$0xff]  ;;  %p820_p7 = scmp.ge.s32.totalorder %s821_s21, %s1813_s29 }
 0x1ec   : >> { %830 = vst [vmem:[%s1508_s22 + $0x8] sm:$0xff] %v829_v41  ;;  %v839_v46 = vld [vmem:[%s1512_s11 + $0x30] sm:$0xff]  ;;  %v841_v47 = vld [vmem:[%s1512_s11 + $0x38] sm:$0xff]  ;;  %v843_v48 = vld [vmem:[%s1512_s11 + $0x40] sm:$0xff] }
 0x1ed   : >> { %832 = vst [vmem:[%s1508_s22 + $0x10] sm:$0xff] %v831_v42  ;;  %s1924_s14 = smov (%p854_p6, %s853_s14), 0  ;;  %v845_v49 = vld [vmem:[%s1512_s11 + $0x48] sm:$0xff]  ;;  %v847_v50 = vld [vmem:[%s1512_s11 + $0x50] sm:$0xff]  ;;  %v849_v51 = vld [vmem:[%s1512_s11 + $0x58] sm:$0xff] }
 0x1ee   : >> { %834 = vst [vmem:[%s1508_s22 + $0x18] sm:$0xff] %v833_v43  ;;  %s856_s17 = smul.u32 104, %s1924_s14  ;;  %v851_v52 = vld [vmem:[%s1512_s11 + $0x60] sm:$0xff]  ;;  %s1914_s12 = smov %s1924_s14 }
 0x1ef   : >> { %836 = vst [vmem:[%s1508_s22 + $0x20] sm:$0xff] %v835_v44 }
 0x1f0   : >> { %838 = vst [vmem:[%s1508_s22 + $0x28] sm:$0xff] %v837_v45  ;;  %s858_s15 = scalar_lea.vmem %s1772_s16, %s856_s17 [#allocation6]   ;;  %s859_s24 = scalar_lea.vmem %s1807_s13, %s856_s17  }
 0x1f1   : >> { %840 = vst [vmem:[%s1508_s22 + $0x30] sm:$0xff] %v839_v46  ;;  %s1913_s11 = smov %s858_s15 }
 0x1f2   : >> { %842 = vst [vmem:[%s1508_s22 + $0x38] sm:$0xff] %v841_v47 }
 0x1f3   : >> { %844 = vst [vmem:[%s1508_s22 + $0x40] sm:$0xff] %v843_v48  ;;  %823 = sbr.rel (!%p820_p7) target bundleno = 490 (0x1ea), region = 144 }
 0x1f4   : >> { %846 = vst [vmem:[%s1508_s22 + $0x48] sm:$0xff] %v845_v49 }
 0x1f5   : >> { %848 = vst [vmem:[%s1508_s22 + $0x50] sm:$0xff] %v847_v50 }
 0x1f6   : >> { %850 = vst [vmem:[%s1508_s22 + $0x58] sm:$0xff] %v849_v51 }
 0x1f7   : >> { %852 = vst [vmem:[%s1508_s22 + $0x60] sm:$0xff] %v851_v52  ;;  %s1912_s22 = smov %s859_s24 }
 0x1f8 PF: > { %1362 = sdivrem.u32 %s1922_s27, 13 }
 0x1f9   : > { %s1170_s6 = smul.u32 104, %s1813_s29 }
 0x1fb   : > { %s1878_s28 = scalar_lea.vmem %s1772_s16, %s1170_s6 [#allocation6]   ;;  %s866_s30 = scalar_lea.vmem %s1807_s13, %s1170_s6  }
 0x201   : > { %s1363_s18 = spop.drf %1362 }
 0x202   : > { %s1364_s25 = spop.drf %1362 }
 0x203   : > { %p1172_p9 = scmp.le.s32.totalorder %s1364_s25, 0 }
 0x204   : > { %s1522_s8 = smov (!%p1172_p9), %s866_s30   ;;  %s1526_s9 = smov (!%p1172_p9), %s1878_s28  }
 0x205   : > { %966 = sbr.rel (%p1172_p9) target bundleno = 530 (0x212), region = 149  ;;  %s1530_s7 = smov (!%p1172_p9), 0  }
 0x206   : > { %s1534_s10 = smov (!%p1172_p9), 0  }
 0x20a LB: >> { %v876_v53 = vld [vmem:[%s1528_s9] sm:$0xff]  ;;  %s878_s16 = sadd.s32 1, %s1532_s7  ;;  %s870_s10 = sadd.s32 1, %s1536_s10   ;;  %s1536_s10 = sphi %s1534_s10, %s870_s10   ;;  %s1532_s7 = sphi %s1530_s7, %s1531_s7   ;;  %s1528_s9 = sphi %s1526_s9, %s883_s9   ;;  %s1524_s8 = sphi %s1522_s8, %s884_s8  }
 0x20b   : >> { %877 = vst [vmem:[%s1524_s8] sm:$0xff] %v876_v53  ;;  %p879_p12 = scmp.ge.s32.totalorder %s878_s16, %s1364_s25  ;;  %p869_p13 = scmp.ge.s32.totalorder %s870_s10, %s1364_s25 }
 0x20d   : >> { %s1926_s16 = smov (%p879_p12, %s878_s16), 0  ;;  %872 = sbr.rel (!%p869_p13) target bundleno = 522 (0x20a), region = 155 }
 0x20e   : >> { %s1173_s27 = sshll.u32 %s1926_s16, 3  ;;  %s1531_s7 = smov %s1926_s16  }
 0x20f   : >> { %s883_s9 = scalar_lea.vmem %s1878_s28, %s1173_s27 [#allocation6]   ;;  %s884_s8 = scalar_lea.vmem %s866_s30, %s1173_s27  }
 0x212 PF: > { %p16_p0 = scmp.ge.s32.totalorder %s1596_s23, 4   ;;  %s1915_s18 = smov %s1496_s19 }
 0x213   : > { %s1916_s19 = smov %s1500_s20  ;;  %s1917_s20 = smov %s1606_s26 }
 0x214   : > { %s1918_s21 = smov %s1596_s23  ;;  %18 = sbr.rel (!%p16_p0) target bundleno = 4 (0x4), region = 166 }
 0x219   :  { %900 = vsyncpa [#allocation3], 1 }
 0x21a   :  { %902 = vsyncpa [#allocation3 + $0x1], 1 }
 0x21b   :  { %903 = vsyncpa [#allocation5], 1 }

</bundles_post_ra>
